<compile_context>
chip_gen: v7x
topology: tpu7x:2x2x1
jax: 0.10.0
libtpu: 0.0.40
codegen_flags: <defaults>
</compile_context>

<pallas_src>
import jax
import jax.numpy as jnp
from jax.experimental import pallas as pl
from jax.experimental.pallas import tpu as pltpu

SPLIT_SIZE = 32
NUM_CHUNKS = 8
MAX_TILE_B = 512  # rows per grid step; keeps double-buffered VMEM small on v7x


def splitcat_kernel(x_ref, y_ref, z_ref, o_ref):
    nx = x_ref.shape[1]
    ny = y_ref.shape[1]
    nz = z_ref.shape[1]
    # cat_1 == [x | y]: 128-lane-aligned unmasked stores.
    o_ref[:, 0:nx] = x_ref[...]
    o_ref[:, nx:nx + ny] = y_ref[...]
    # cat_2 == [x[:, :32] | z]: build the 64-lane tail in registers and store
    # it once (single masked store instead of two + a lane shift for z).
    tail = jnp.concatenate([x_ref[:, 0:SPLIT_SIZE], z_ref[...]], axis=-1)
    o_ref[:, nx + ny:nx + ny + SPLIT_SIZE + nz] = tail


def _pick_tile_b(B: int) -> int:
    # Whole batch in one block if small (always a legal block shape), otherwise
    # a large multiple-of-8 tile that fits comfortably in scoped VMEM on all
    # of v5e / v6e / v7x with double buffering.
    if B <= MAX_TILE_B:
        return B
    return MAX_TILE_B


def split_cat_forward(x: jax.Array, y: jax.Array, z: jax.Array) -> jax.Array:
    assert x.ndim == 2 and y.ndim == 2 and z.ndim == 2
    B, nx = x.shape
    _, ny = y.shape
    _, nz = z.shape
    assert y.shape[0] == B and z.shape[0] == B
    # The PyTorch module indexes split[0..7] of split(cat, 32, dim=1), so the
    # concatenated width must be exactly 8 * 32 = 256 (cat_1 == full cat).
    assert nx + ny == SPLIT_SIZE * NUM_CHUNKS, "x.shape[1] + y.shape[1] must be 256"
    assert nx >= SPLIT_SIZE, "x must cover the first split chunk"

    out_w = nx + ny + SPLIT_SIZE + nz
    out_shape = jax.ShapeDtypeStruct((B, out_w), x.dtype)

    tile_b = _pick_tile_b(B)
    grid = (pl.cdiv(B, tile_b),)

    dtype_size = jnp.dtype(x.dtype).itemsize
    bytes_accessed = B * (nx + ny + nz + out_w) * dtype_size

    return pl.pallas_call(
        splitcat_kernel,
        out_shape=out_shape,
        grid=grid,
        in_specs=[
            pl.BlockSpec((tile_b, nx), lambda i: (i, 0)),
            pl.BlockSpec((tile_b, ny), lambda i: (i, 0)),
            pl.BlockSpec((tile_b, nz), lambda i: (i, 0)),
        ],
        out_specs=pl.BlockSpec((tile_b, out_w), lambda i: (i, 0)),
        compiler_params=pltpu.CompilerParams(
            dimension_semantics=("parallel",),
        ),
        cost_estimate=pl.CostEstimate(
            flops=0, transcendentals=0, bytes_accessed=bytes_accessed
        ),
    )(x, y, z)


def split_cat_reference(x, y, z):
    cat = jnp.concatenate([x, y], axis=1)
    chunks = [cat[:, i * SPLIT_SIZE:(i + 1) * SPLIT_SIZE] for i in range(NUM_CHUNKS)]
    cat_1 = jnp.concatenate(chunks, axis=1)
    cat_2 = jnp.concatenate([chunks[0], z], axis=1)
    return jnp.concatenate([cat_1, cat_2], axis=1)


if __name__ == "__main__":
    key = jax.random.PRNGKey(0)
    kx, ky, kz = jax.random.split(key, 3)

    # NOTE: at this toy size plain XLA concat would beat any Pallas kernel on
    # launch overhead alone; the kernel pays off for large B (thousands of rows).
    B = 8
    x = jax.random.normal(kx, (B, 128), dtype=jnp.float32)
    y = jax.random.normal(ky, (B, 128), dtype=jnp.float32)
    z = jax.random.normal(kz, (B, 32), dtype=jnp.float32)

    out = split_cat_forward(x, y, z)
    out = jax.block_until_ready(out)

    ref = split_cat_reference(x, y, z)
    assert out.shape == (B, 320), out.shape
    assert jnp.array_equal(out, ref), "mismatch vs reference"

    print("KERNEL_OK")
</pallas_src>

<mosaic_0001>
module attributes {stable_mosaic.version = 11 : i64} {
  func.func @splitcat_kernel(%arg0: i32, %arg1: memref<8x128xf32, #tpu.memory_space<vmem>>, %arg2: memref<8x128xf32, #tpu.memory_space<vmem>>, %arg3: memref<8x32xf32, #tpu.memory_space<vmem>>, %arg4: memref<8x320xf32, #tpu.memory_space<vmem>>) attributes {dimension_semantics = [#tpu.dimension_semantics<parallel>], iteration_bounds = array<i64: 1>, scalar_prefetch = 0 : i64, scratch_operands = 0 : i64, tpu.core_type = #tpu.core_type<tc>, window_params = [{transform_indices = @transform_0, window_bounds = array<i64: 8, 128>}, {transform_indices = @transform_1, window_bounds = array<i64: 8, 128>}, {transform_indices = @transform_2, window_bounds = array<i64: 8, 32>}, {transform_indices = @transform_3, window_bounds = array<i64: 8, 320>}]} {
    %c0 = arith.constant 0 : index
    %c0_0 = arith.constant 0 : index
    %0 = vector.load %arg1[%c0, %c0_0] : memref<8x128xf32, #tpu.memory_space<vmem>>, vector<8x128xf32>
    %c0_1 = arith.constant 0 : index
    %c0_2 = arith.constant 0 : index
    %1 = vector.load %arg4[%c0_1, %c0_2] : memref<8x320xf32, #tpu.memory_space<vmem>>, vector<8x128xf32>
    tpu.vector_store %arg4[%c0_1, %c0_2], %0 {strides = array<i32>} : memref<8x320xf32, #tpu.memory_space<vmem>>, vector<8x128xf32>,
    %c0_3 = arith.constant 0 : index
    %c0_4 = arith.constant 0 : index
    %2 = vector.load %arg2[%c0_3, %c0_4] : memref<8x128xf32, #tpu.memory_space<vmem>>, vector<8x128xf32>
    %c0_5 = arith.constant 0 : index
    %c128 = arith.constant 128 : index
    %3 = vector.load %arg4[%c0_5, %c128] : memref<8x320xf32, #tpu.memory_space<vmem>>, vector<8x128xf32>
    tpu.vector_store %arg4[%c0_5, %c128], %2 {strides = array<i32>} : memref<8x320xf32, #tpu.memory_space<vmem>>, vector<8x128xf32>,
    %c0_6 = arith.constant 0 : index
    %c0_7 = arith.constant 0 : index
    %4 = vector.load %arg1[%c0_6, %c0_7] : memref<8x128xf32, #tpu.memory_space<vmem>>, vector<8x32xf32>
    %c0_8 = arith.constant 0 : index
    %c0_9 = arith.constant 0 : index
    %5 = vector.load %arg3[%c0_8, %c0_9] : memref<8x32xf32, #tpu.memory_space<vmem>>, vector<8x32xf32>
    %6 = tpu.concatenate %4, %5 in 1 : vector<8x32xf32>, vector<8x32xf32> -> vector<8x64xf32>
    %c0_10 = arith.constant 0 : index
    %c256 = arith.constant 256 : index
    %7 = vector.load %arg4[%c0_10, %c256] : memref<8x320xf32, #tpu.memory_space<vmem>>, vector<8x64xf32>
    tpu.vector_store %arg4[%c0_10, %c256], %6 {strides = array<i32>} : memref<8x320xf32, #tpu.memory_space<vmem>>, vector<8x64xf32>,
    return
  }
  func.func @transform_0(%arg0: i32) -> (i32, i32) {
    %c0_i32 = arith.constant 0 : i32
    %c0_i32_0 = arith.constant 0 : i32
    return %arg0, %c0_i32 : i32, i32
  }
  func.func @transform_1(%arg0: i32) -> (i32, i32) {
    %c0_i32 = arith.constant 0 : i32
    %c0_i32_0 = arith.constant 0 : i32
    return %arg0, %c0_i32 : i32, i32
  }
  func.func @transform_2(%arg0: i32) -> (i32, i32) {
    %c0_i32 = arith.constant 0 : i32
    %c0_i32_0 = arith.constant 0 : i32
    return %arg0, %c0_i32 : i32, i32
  }
  func.func @transform_3(%arg0: i32) -> (i32, i32) {
    %c0_i32 = arith.constant 0 : i32
    %c0_i32_0 = arith.constant 0 : i32
    return %arg0, %c0_i32 : i32, i32
  }
}

</mosaic_0001>

<bundles_post_ra>
// kernel: tpu_custom_call.1
= control target key start
LH: loop header
LB: loop body
LE: loop exit
PB: predicated region body
PF: predicated region fallthrough
CT: control target
= control target key end

     0   :  { %8 = vsyncpa [#allocation3], 0  ;;  %s252_s0 = inlined_call_operand.hbm [shape: f32[8,128], index: 0, kind: input, shape index: {}]   ;;  %s253_s1 = inlined_call_operand.hbm [shape: f32[8,128], index: 1, kind: input, shape index: {}]   ;;  %s254_s2 = inlined_call_operand.hbm [shape: f32[8,32], index: 2, kind: input, shape index: {}]   ;;  %s255_s3 = inlined_call_operand.hbm [shape: f32[8,320], index: 3, kind: output, shape index: {}]  }
   0x1   :  { %9 = vsyncpa [#allocation6], 0 }
   0x2   :  { %10 = vsyncpa [#allocation4], 0  ;;  %s179_s12 = smov [#allocation5]   ;;  %s180_s14 = smov [#allocation2]  }
   0x3   :  { %s27_s13 = sshll.u32 %s179_s12, 4  ;;  %s17_s15 = sshll.u32 %s180_s14, 4  ;;  %s28_s13 = int_to_ptr.vmem [resolvable:$true] %s27_s13  ;;  %s18_s15 = int_to_ptr.vmem [resolvable:$true] %s17_s15 }
   0x4   :  { %s85_s18 = scalar_lea.hbm %s253_s1, 128 }
   0x5   :  { %p86_p0 = scmp.ne.s32.totalorder %s253_s1, %s85_s18  ;;  %p89_p1 = scmp.lt.u32.totalorder %s85_s18, %s253_s1 }
   0x7   :  { %p91_p2 = pnand %p89_p1, %p86_p0 }
   0x9   :  { %94 = shalt.err (!%p91_p2)
}
   0xa   :  { %s95_s23 = scalar_lea.vmem %s28_s13, 128  ;;  %p100_p4 = scmp.lt.s32.totalorder %s28_s13, %s28_s13 }
   0xb   :  { %p96_p3 = scmp.ne.s32.totalorder %s28_s13, %s95_s23  ;;  %p101_p5 = scmp.lt.s32.totalorder %s95_s23, %s95_s23 }
   0xd   :  { %p102_p6 = por %p101_p5, %p100_p4 }
   0xf   :  { %p103_p7 = pnand %p102_p6, %p96_p3 }
  0x11   :  { %106 = shalt.err (!%p103_p7)
}
  0x12   :  { %30 = dma.hbm_to_vmem [thread:$0]  %s253_s1, 128, %s28_s13, [#allocation6]  }
  0x13   :  { %s107_s28 = scalar_lea.hbm %s252_s0, 128 }
  0x14   :  { %p108_p8 = scmp.ne.s32.totalorder %s252_s0, %s107_s28  ;;  %p111_p9 = scmp.lt.u32.totalorder %s107_s28, %s252_s0 }
  0x16   :  { %p113_p10 = pnand %p111_p9, %p108_p8 }
  0x18   :  { %116 = shalt.err (!%p113_p10)
}
  0x19   :  { %s117_s6 = scalar_lea.vmem %s18_s15, 128  ;;  %p122_p12 = scmp.lt.s32.totalorder %s18_s15, %s18_s15 }
  0x1a   :  { %p118_p11 = scmp.ne.s32.totalorder %s18_s15, %s117_s6  ;;  %p123_p13 = scmp.lt.s32.totalorder %s117_s6, %s117_s6 }
  0x1c   :  { %p124_p0 = por %p123_p13, %p122_p12 }
  0x1e   :  { %p125_p1 = pnand %p124_p0, %p118_p11 }
  0x20   :  { %128 = shalt.err (!%p125_p1)
}
  0x21   :  { %20 = dma.hbm_to_vmem [thread:$0]  %s252_s0, 128, %s18_s15, [#allocation3]  }
  0x22   :  { %s181_s8 = smov [#allocation7]   ;;  %s129_s12 = scalar_lea.hbm %s254_s2, 128 }
  0x23   :  { %s37_s9 = sshll.u32 %s181_s8, 4  ;;  %p130_p2 = scmp.ne.s32.totalorder %s254_s2, %s129_s12  ;;  %s38_s9 = int_to_ptr.vmem [resolvable:$true] %s37_s9 }
  0x24   :  { %p133_p3 = scmp.lt.u32.totalorder %s129_s12, %s254_s2 }
  0x26   :  { %p135_p4 = pnand %p133_p3, %p130_p2 }
  0x28   :  { %138 = shalt.err (!%p135_p4)
}
  0x29   :  { %s139_s18 = scalar_lea.vmem %s38_s9, 128  ;;  %p144_p6 = scmp.lt.s32.totalorder %s38_s9, %s38_s9 }
  0x2a   :  { %p140_p5 = scmp.ne.s32.totalorder %s38_s9, %s139_s18  ;;  %p145_p7 = scmp.lt.s32.totalorder %s139_s18, %s139_s18 }
  0x2c   :  { %p146_p8 = por %p145_p7, %p144_p6 }
  0x2e   :  { %p147_p9 = pnand %p146_p8, %p140_p5 }
  0x30   :  { %150 = shalt.err (!%p147_p9)
}
  0x31   :  { %40 = dma.hbm_to_vmem [thread:$0]  %s254_s2, 128, %s38_s9, [#allocation6]  }
  0x32   :  { %173 = dma.done.wait [#allocation3], 128  }
  0x33   :  { %174 = vsyncadd [#allocation3], 4294967168 }
  0x34   :  { %175 = dma.done.wait [#allocation6], 256  }
  0x35   :  { %176 = vsyncadd [#allocation6], 4294967040  ;;  %v55_v0 = vld [vmem:[#allocation7] sm:$0xff]  ;;  %v54_v1 = vld [vmem:[#allocation2] sm:$0xff]  ;;  %s182_s19 = smov 32   ;;  %s183_s20 = smov [#allocation8]  }
  0x36   :  { %v52_v2 = vld [vmem:[#allocation5] sm:$0xff]  ;;  %57 = vrot.lane.b32.xlu0 %v55_v0, %s182_s19  ;;  %51 = vst [vmem:[#allocation8] sm:$0xff] %v54_v1  ;;  %s70_s21 = sshll.u32 %s183_s20, 4  ;;  %vm60_vm0 = vcmask 261120   ;;  %vm62_vm1 = vcmask 523264   ;;  %s71_s21 = int_to_ptr.vmem [resolvable:$true] %s70_s21 }
  0x37   :  { %53 = vst [vmem:[#allocation8 + $0x8] sm:$0xff] %v52_v2  ;;  %s151_s2 = scalar_lea.vmem %s71_s21, 384  ;;  %p156_p11 = scmp.lt.s32.totalorder %s71_s21, %s71_s21 }
  0x38   :  { %p152_p10 = scmp.ne.s32.totalorder %s71_s21, %s151_s2  ;;  %p157_p12 = scmp.lt.s32.totalorder %s151_s2, %s151_s2 }
  0x3a   :  { %p158_p13 = por %p157_p12, %p156_p11 }
  0x3c   :  { %p159_p0 = pnand %p158_p13, %p152_p10 }
  0xa8   :  { %v58_v3 = vpop.permute.xlu0 %57 }
  0xa9   :  { %v61_v4 = vsel %vm60_vm0, %v54_v1, %v58_v3 }
  0xaa   :  { %63 = vst.msk [vmem:[#allocation8 + $0x10] sm:$0xff] %vm62_vm1, %v61_v4 }
  0xab   :  { %162 = shalt.err (!%p159_p0)
}
  0xac   :  { %s163_s24 = scalar_lea.hbm %s255_s3, 384 }
  0xad   :  { %p164_p1 = scmp.ne.s32.totalorder %s255_s3, %s163_s24  ;;  %p167_p2 = scmp.lt.u32.totalorder %s163_s24, %s255_s3 }
  0xaf   :  { %p169_p3 = pnand %p167_p2, %p164_p1 }
  0xb1   :  { %172 = shalt.err (!%p169_p3)
}
  0xb2   :  { %73 = dma.vmem_to_hbm [thread:$0]  %s71_s21, 384, %s255_s3, [#allocation4]  }
  0xb3   :  { %177 = dma.done.wait [#allocation4], 384  }
  0xb4   :  { %178 = vsyncadd [#allocation4], 4294966912 }
  0xb5   :  { %77 = vsyncpa [#allocation3], 1 }
  0xb6   :  { %78 = vsyncpa [#allocation6], 1 }
  0xb7   :  { %79 = vsyncpa [#allocation4], 1 }

</bundles_post_ra>
